<compile_context>
chip_gen: v5e
topology: v5e:2x2
jax: 0.10.0
libtpu: 0.0.40
codegen_flags: <defaults>
</compile_context>

<pallas_src>
import jax
import jax.numpy as jnp
from jax.experimental import pallas as pl
from jax.experimental.pallas import tpu as pltpu


def _round_up(x, m):
    return ((x + m - 1) // m) * m


def mlp_affine_kernel(x_ref, w_ref, b_ref, o_ref):
    # Single fused affine layer: (bm,128) @ (128,10) + (1,10).
    # Cast the streamed x tile to bf16 for single-pass MXU execution; accumulate f32.
    xb = x_ref[...].astype(jnp.bfloat16)
    acc = jnp.dot(xb, w_ref[...], preferred_element_type=jnp.float32)
    o_ref[...] = (acc + b_ref[...]).astype(o_ref.dtype)


def mynet2_forward(x, params, *, bm=2048):
    """x: (B, 128) float32. params: dict of (in,out)-transposed weights & biases."""
    B, D_in = x.shape
    assert D_in == 128
    w1, b1 = params["w1"], params["b1"]   # (128,64), (1,64)
    w2, b2 = params["w2"], params["b2"]   # (64,64),  (1,64)
    w3, b3 = params["w3"], params["b3"]   # (64,10),  (1,10)

    # Activation-free MLP == one affine map. Precompute the fused weight/bias in f32
    # (tiny matmuls; under jit this hoists out of the streaming hot path).
    w_eff = (w1 @ w2) @ w3                      # (128, 10) f32
    b_eff = ((b1 @ w2) + b2) @ w3 + b3          # (1, 10)  f32
    w_eff_bf16 = w_eff.astype(jnp.bfloat16)     # bf16 MXU operand

    N_out = w_eff.shape[1]                      # 10

    # Batch tile: large for throughput (f32-sublane multiple of 8), but capped so
    # grid_m >= 2 when B allows it -> both v7x TensorCores get work ("parallel" axis).
    bm_req = max(8, _round_up(bm, 8))
    bm_eff = min(bm_req, max(8, _round_up(pl.cdiv(B, 2), 8)))
    grid_m = pl.cdiv(B, bm_eff)                 # ragged last block handled by Pallas
                                                # (out-of-bounds rows are never stored)

    out = pl.pallas_call(
        mlp_affine_kernel,
        out_shape=jax.ShapeDtypeStruct((B, N_out), x.dtype),
        grid_spec=pltpu.PrefetchScalarGridSpec(
            num_scalar_prefetch=0,
            grid=(grid_m,),
            in_specs=[
                pl.BlockSpec((bm_eff, 128), lambda i: (i, 0)),   # x tile (streamed)
                pl.BlockSpec((128, N_out),  lambda i: (0, 0)),   # W_eff (resident; copy
                pl.BlockSpec((1, N_out),    lambda i: (0, 0)),   # b_eff  elided across steps)
            ],
            out_specs=pl.BlockSpec((bm_eff, N_out), lambda i: (i, 0)),
        ),
        compiler_params=pltpu.CompilerParams(
            dimension_semantics=("parallel",),
            # VMEM budget: double-buffered x (bm*128*4B) + out (bm*10*4B) tiles.
            # bm=2048 -> ~2.2 MiB total, well under the scoped defaults on
            # v5e (16 MiB), v6e (32 MiB) and v7x (32 MiB of 64 MiB physical).
            # Only set vmem_limit_bytes if bm is pushed to >= 8192 (re-derive for v7x).
        ),
    )(x, w_eff_bf16, b_eff)

    return out  # already (B, 10): no row/lane slice, no extra HBM pass


def init_params(key):
    """Deterministic PyTorch-style init: U(-1/sqrt(fan_in), 1/sqrt(fan_in))."""
    dims = [(128, 64), (64, 64), (64, 10)]
    params = {}
    for idx, (fan_in, fan_out) in enumerate(dims, start=1):
        key, kw, kb = jax.random.split(key, 3)
        bound = 1.0 / jnp.sqrt(fan_in)
        # store weights already transposed to (in, out)
        params[f"w{idx}"] = jax.random.uniform(
            kw, (fan_in, fan_out), jnp.float32, -bound, bound)
        params[f"b{idx}"] = jax.random.uniform(
            kb, (1, fan_out), jnp.float32, -bound, bound)
    return params


def reference_forward(x, params):
    # Layer-by-layer f32 reference (matches the PyTorch module's math).
    h = x @ params["w1"] + params["b1"]
    h = h @ params["w2"] + params["b2"]
    h = h @ params["w3"] + params["b3"]
    return h


if __name__ == "__main__":
    key = jax.random.PRNGKey(0)
    key, kx1, kx2 = jax.random.split(key, 3)
    params = init_params(key)

    fwd = jax.jit(mynet2_forward)

    # Small, deterministic test shapes (in_features=128). B=13 exercises the
    # ragged-last-block (masked store) path; B=16 splits into two grid steps.
    for B, kx in ((16, kx1), (13, kx2)):
        x = jax.random.normal(kx, (B, 128), jnp.float32)
        out = fwd(x, params)
        out = jax.block_until_ready(out)
        ref = reference_forward(x, params)
        assert out.shape == (B, 10)
        # Tolerance loosened for the layer-collapse reordering + bf16 MXU operands.
        assert jnp.allclose(out, ref, atol=2e-2, rtol=2e-2)

    print("KERNEL_OK")
</pallas_src>

<mosaic_0001>
module attributes {stable_mosaic.version = 11 : i64} {
  func.func @mlp_affine_kernel(%arg0: i32, %arg1: memref<8x128xf32, #tpu.memory_space<vmem>>, %arg2: memref<128x10xbf16, #tpu.memory_space<vmem>>, %arg3: memref<1x10xf32, #tpu.memory_space<vmem>>, %arg4: memref<8x10xf32, #tpu.memory_space<vmem>>) attributes {dimension_semantics = [#tpu.dimension_semantics<parallel>], iteration_bounds = array<i64: 2>, scalar_prefetch = 0 : i64, scratch_operands = 0 : i64, tpu.core_type = #tpu.core_type<tc>, window_params = [{transform_indices = @transform_0, window_bounds = array<i64: 8, 128>}, {pipeline_mode = #tpu.pipeline_mode<synchronous>, transform_indices = @transform_1, window_bounds = array<i64: 128, 10>}, {pipeline_mode = #tpu.pipeline_mode<synchronous>, transform_indices = @transform_2, window_bounds = array<i64: 1, 10>}, {transform_indices = @transform_3, window_bounds = array<i64: 8, 10>}]} {
    %c0 = arith.constant 0 : index
    %c0_0 = arith.constant 0 : index
    %0 = vector.load %arg1[%c0, %c0_0] : memref<8x128xf32, #tpu.memory_space<vmem>>, vector<8x128xf32>
    %1 = arith.truncf %0 : vector<8x128xf32> to vector<8x128xbf16>
    %c0_1 = arith.constant 0 : index
    %c0_2 = arith.constant 0 : index
    %2 = vector.load %arg2[%c0_1, %c0_2] : memref<128x10xbf16, #tpu.memory_space<vmem>>, vector<128x10xbf16>
    %cst = arith.constant dense<0.000000e+00> : vector<8x10xf32>
    %3 = tpu.matmul %1, %2, %cst {dimension_numbers = #tpu.dot_dimension_numbers<[1], [0], [0], [1], [0, 0, 1, 1], [], []>} : vector<8x128xbf16>, vector<128x10xbf16>, vector<8x10xf32> -> vector<8x10xf32>
    %c0_3 = arith.constant 0 : index
    %c0_4 = arith.constant 0 : index
    %4 = vector.load %arg3[%c0_3, %c0_4] : memref<1x10xf32, #tpu.memory_space<vmem>>, vector<1x10xf32>
    %5 = vector.broadcast %4 : vector<1x10xf32> to vector<8x10xf32>
    %6 = arith.addf %3, %5 : vector<8x10xf32>
    %c0_5 = arith.constant 0 : index
    %c0_6 = arith.constant 0 : index
    %7 = vector.load %arg4[%c0_5, %c0_6] : memref<8x10xf32, #tpu.memory_space<vmem>>, vector<8x10xf32>
    tpu.vector_store %arg4[%c0_5, %c0_6], %6 {strides = array<i32>} : memref<8x10xf32, #tpu.memory_space<vmem>>, vector<8x10xf32>,
    return
  }
  func.func @transform_0(%arg0: i32) -> (i32, i32) {
    %c0_i32 = arith.constant 0 : i32
    %c0_i32_0 = arith.constant 0 : i32
    return %arg0, %c0_i32 : i32, i32
  }
  func.func @transform_1(%arg0: i32) -> (i32, i32) {
    %c0_i32 = arith.constant 0 : i32
    %c0_i32_0 = arith.constant 0 : i32
    %c0_i32_1 = arith.constant 0 : i32
    return %c0_i32, %c0_i32_0 : i32, i32
  }
  func.func @transform_2(%arg0: i32) -> (i32, i32) {
    %c0_i32 = arith.constant 0 : i32
    %c0_i32_0 = arith.constant 0 : i32
    %c0_i32_1 = arith.constant 0 : i32
    return %c0_i32, %c0_i32_0 : i32, i32
  }
  func.func @transform_3(%arg0: i32) -> (i32, i32) {
    %c0_i32 = arith.constant 0 : i32
    %c0_i32_0 = arith.constant 0 : i32
    return %arg0, %c0_i32 : i32, i32
  }
}

</mosaic_0001>

<bundles_post_ra>
// kernel: mynet2_forward.1
= control target key start
LH: loop header
LB: loop body
LE: loop exit
PB: predicated region body
PF: predicated region fallthrough
CT: control target
= control target key end

     0   :  { %8 = vsyncpa [#allocation3], 0  ;;  %s612_s0 = inlined_call_operand.vmem [shape: f32[16,128], index: 0, kind: input, shape index: {}]   ;;  %s613_s1 = inlined_call_operand.vmem [shape: bf16[128,10], index: 1, kind: input, shape index: {}]   ;;  %s614_s2 = inlined_call_operand.vmem [shape: f32[1,10], index: 2, kind: input, shape index: {}]   ;;  %s615_s3 = inlined_call_operand.hbm [shape: f32[16,10], index: 3, kind: output, shape index: {}]  }
   0x1   :  { %10 = vsyncpa [#allocation3 + $0x1], 0  ;;  %s500_s12 = smov 0   ;;  %s502_s13 = smov 0  }
   0x2   :  { %s504_s14 = smov 0   ;;  %s506_s15 = smov 0  }
   0x3 LB: > { %s521_s16 = sadd.s32 4294967295, %s478_s15   ;;  %s326_s17 = sadd.s32 4294967294, %s478_s15   ;;  %s478_s15 = sphi %s506_s15, %s621_s15   ;;  %s474_s14 = sphi %s504_s14, %s620_s14   ;;  %s470_s13 = sphi %s502_s13, %s619_s13   ;;  %s466_s12 = sphi %s500_s12, %s618_s12  }
   0x4   : > { %s525_s18 = sadd.s32 1, %s478_s15   ;;  %s91_s19 = sadd.s32 1, %s474_s14 }
   0x5   : > { %s88_s20 = ssub.s32 %s478_s15, %s525_s18  ;;  %p101_p0 = scmp.ne.s32.totalorder %s474_s14, %s470_s13 }
   0x6   : > { %p89_p1 = scmp.eq.s32.totalorder %s88_s20, 0  ;;  %p102_p2 = scmp.eq.s32.totalorder %s521_s16, 1 }
   0x7   : > { %p107_p3 = scmp.ne.s32.totalorder %s470_s13, %s466_s12  ;;  %p108_p4 = scmp.eq.s32.totalorder %s326_s17, 1 }
   0x8   : > { %s536_s21 = scalar_select %p89_p1, %s474_s14, %s91_s19  }
   0x9   : > { %p538_p5 = por %p102_p2, %p101_p0  ;;  %p542_p6 = por %p108_p4, %p107_p3 }
   0xa   : > { %p329_p7 = scmp.ge.s32.totalorder %s478_s15, 1  ;;  %p139_p8 = scmp.lt.s32.totalorder %s478_s15, 3 }
   0xc   : > { %p140_p9 = pnand %p329_p7, %p139_p8 }
   0xd   : > { %p162_p10 = scmp.lt.s32.totalorder (!%p140_p9), %s521_s16, 1  ;;  %s159_s27 = sand.u32 (!%p140_p9), 1, %s470_s13  }
   0xe   : > { %143 = sbr.rel (%p140_p9) target bundleno = 185 (0xb9), region = 32  ;;  %s365_s28 = sshll.u32 (!%p140_p9), %s521_s16, 3 }
   0xf   : > { %s330_s29 = sshll.u32 (!%p140_p9), %s159_s27, 3  ;;  %s262_s5 = scalar_lea.hbm (!%p140_p9), %s615_s3, %s365_s28 }
  0x10   : > { %s161_s8 = scalar_lea.vmem (!%p140_p9), [#allocation2], %s330_s29 }
  0x11   : > { %s264_s9 = sshll.u32 (!%p140_p9), %s161_s8, 4  ;;  %s265_s9 = int_to_ptr.vmem [resolvable:$true] %s264_s9 }
  0x13   : > { %v375_v0 = vld [vmem:[%s613_s1 + $0x38] sm:$0xff]  ;;  %v374_v1 = vld [vmem:[%s613_s1 + $0x30] sm:$0xff]  ;;  %v373_v2 = vld [vmem:[%s613_s1 + $0x28] sm:$0xff]  ;;  %s163_s7 = scalar_select %p162_p10, %s521_s16, 1  ;;  %vm249_vm0 = vcmask 80896  }
  0x14   : > { %236 = vmatpush.bf16.msra.mxu0 %v375_v0  ;;  %v372_v3 = vld [vmem:[%s613_s1 + $0x20] sm:$0xff]  ;;  %v371_v4 = vld [vmem:[%s613_s1 + $0x18] sm:$0xff]  ;;  %v370_v5 = vld [vmem:[%s613_s1 + $0x10] sm:$0xff]  ;;  %s252_s16 = scalar_lea.sflag [#allocation3], %s159_s27 }
  0x15   : > { %s331_s10 = sshll.u32 %s163_s7, 3  ;;  %v369_v6 = vld [vmem:[%s613_s1 + $0x8] sm:$0xff]  ;;  %v368_v7 = vld [vmem:[%s613_s1] sm:$0xff] }
  0x16   : > { %s165_s24 = scalar_lea.vmem %s612_s0, %s331_s10  ;;  %v415_v10 = vld [vmem:[%s614_s2] ss:$0 sm:$0xff]  ;;  %s266_s10 = sshll.u32 %s262_s5, 4  ;;  %s267_s10 = int_to_ptr.hbm [resolvable:$true] %s266_s10 }
  0x17   : > { %v166_v8 = vld [vmem:[%s165_s24] sm:$0xff]  ;;  %s430_s11 = sshra.s32 %s267_s10, 4  ;;  %s436_s24 = scalar_lea.hbm %s615_s3, 16  ;;  %s431_s11 = int_to_ptr.hbm [resolvable:$true] %s430_s11 }
  0x18   : > { %237 = vmatpush.bf16.msra.mxu0 %v374_v1  ;;  %v167_v9 = vpack.c.bf16 %v166_v8, %v166_v8  ;;  %s432_s17 = scalar_lea.hbm %s431_s11, 8  ;;  %p437_p0 = scmp.lt.s32.totalorder %s431_s11, %s615_s3 }
  0x19   : > { %p433_p11 = scmp.ne.s32.totalorder %s431_s11, %s432_s17  ;;  %p438_p1 = scmp.lt.s32.totalorder %s436_s24, %s432_s17 }
  0x1b   : > { %p434_p12 = pnand %p433_p11, %p538_p5  ;;  %p439_p2 = por %p438_p1, %p437_p0 }
  0x1c   : > { %238 = vmatpush.bf16.msra.mxu0 %v373_v2 }
  0x1d   : > { %p435_p13 = pneg %p434_p12 }
  0x1f   : > { %p440_p3 = pnand %p439_p2, %p435_p13 }
  0x20   : > { %239 = vmatpush.bf16.msra.mxu0 %v372_v3 }
  0x24   : > { %240 = vmatpush.bf16.msra.mxu0 %v371_v4 }
  0x28   : > { %241 = vmatpush.bf16.msra.mxu0 %v370_v5 }
  0x2c   : > { %242 = vmatpush.bf16.msra.mxu0 %v369_v6 }
  0x30   : > { %243 = vmatpush.bf16.msra.mxu0 %v368_v7 }
  0x33   : > { %244 = vmatmul.bf16.vlgmr.msra.gmra.mxu0 %v167_v9 }
  0xb0   : > { %v245_v11 = vpop.f32.mrf.mxu0 }
  0xb1   : > { %v246_v12 = vadd.f32 %v415_v10, %v245_v11 }
  0xb3   : > { %250 = vst.msk [vmem:[%s161_s8] sm:$0xff] %vm249_vm0, %v246_v12 }
  0xb4   : > { %443 = shalt.err (!%p440_p3)
}
  0xb5   : > { %376 = dma.vmem_to_hbm [thread:$0]  (%p538_p5), %s265_s9, 128, %s267_s10, %s252_s16  }
  0xb8   : > { %v247_v13 = vpop.f32.mrf.mxu0 }
  0xb9 PF: > { %p382_p4 = scmp.ge.s32.totalorder %s478_s15, 2  ;;  %s278_s27 = sand.u32 1, %s466_s12  }
  0xba   : > { %s279_s28 = scalar_lea.sflag [#allocation3], %s278_s27 }
  0xbb   : > { %p379_p7 = pnand %p382_p4, %p542_p6 }
  0xbd   : > { %p380_p8 = pneg %p379_p7 }
  0xbf   : > { %461 = dma.done.wait (%p380_p8), %s279_s28, 128  }
  0xc0   : > { %463 = vsyncadd (%p380_p8), %s279_s28, 4294967168  ;;  %p13_p9 = scmp.ge.s32.totalorder %s525_s18, 4   ;;  %s618_s12 = smov %s470_s13 }
  0xc1   : > { %s619_s13 = smov %s474_s14  ;;  %s620_s14 = smov %s536_s21 }
  0xc2   : > { %s621_s15 = smov %s525_s18  ;;  %15 = sbr.rel (!%p13_p9) target bundleno = 3 (0x3), region = 67 }
  0xc7   :  { %285 = vsyncpa [#allocation3], 1 }
  0xc8   :  { %287 = vsyncpa [#allocation3 + $0x1], 1 }

</bundles_post_ra>
